<compile_context>
chip_gen: v7x
topology: tpu7x:2x2x1
jax: 0.10.0
libtpu: 0.0.40
codegen_flags: <defaults>
</compile_context>

<pallas_src>
import functools

import jax
import jax.numpy as jnp
from jax.experimental import pallas as pl
from jax.experimental.pallas import tpu as pltpu


def _round_up(x, m):
    return (x + m - 1) // m * m


def _uniform_bits(shape, seed_u32, salt, row_offset_u32):
    """Counter-based per-element uint32 hash (portable; no pltpu.prng_*)."""
    rows = jax.lax.broadcasted_iota(jnp.uint32, shape, 0) + row_offset_u32
    cols = jax.lax.broadcasted_iota(jnp.uint32, shape, 1)
    x = rows * jnp.uint32(0x9E3779B1)
    x = x ^ (cols * jnp.uint32(0x85EBCA77))
    x = x + (seed_u32 + jnp.uint32(salt)) * jnp.uint32(0xC2B2AE3D)
    # murmur3 fmix32 finalizer
    x = x ^ (x >> jnp.uint32(16))
    x = x * jnp.uint32(0x85EBCA6B)
    x = x ^ (x >> jnp.uint32(13))
    x = x * jnp.uint32(0xC2B2AE35)
    x = x ^ (x >> jnp.uint32(16))
    return x


def prenet_kernel(seed_ref, x_ref, w1_ref, b1_ref, w2_ref, b2_ref, o_ref,
                  *, p, training, tm):
    do_dropout = training and p > 0.0
    if do_dropout:
        # keep prob = 1 - p : drop iff bits < p * 2^32
        thresh = jnp.uint32(min(int(round(p * 4294967296.0)), 4294967295))
        seed_u32 = seed_ref[0].astype(jnp.uint32)
        row0 = (pl.program_id(0) * tm).astype(jnp.uint32)

    # fc1 + ReLU  (bf16 MXU inputs, f32 accumulation)
    h = jnp.dot(x_ref[...], w1_ref[...], preferred_element_type=jnp.float32)
    h = jnp.maximum(h + b1_ref[...], 0.0)
    if do_dropout:
        # 1/(1-p) is folded into w2 host-side, so only zeroing is needed here.
        keep1 = _uniform_bits(h.shape, seed_u32, 0x1, row0) >= thresh
        h = jnp.where(keep1, h, 0.0)

    # fc2 + ReLU
    y = jnp.dot(h.astype(w2_ref.dtype), w2_ref[...],
                preferred_element_type=jnp.float32)
    y = jnp.maximum(y + b2_ref[...], 0.0)
    if do_dropout:
        keep2 = _uniform_bits(y.shape, seed_u32, 0x2, row0) >= thresh
        y = y * jnp.where(keep2, jnp.float32(1.0 / (1.0 - p)),
                          jnp.float32(0.0))

    o_ref[...] = y.astype(o_ref.dtype)


def prenet_forward(x_tbc, w1, b1, w2, b2, seed, *, p=0.5, training=True,
                   tm=256):
    """PreNet forward.

    x_tbc : (T, B, C_in) f32
    w1    : (C_in, H) f32   (transposed vs. PyTorch's (out, in) layout)
    b1    : (H,) f32
    w2    : (H, H) f32
    b2    : (H,) f32
    Returns (T, B, H) f32.
    """
    assert 0.0 <= p < 1.0, "dropout p must be in [0, 1)"
    T, B, C_in = x_tbc.shape
    H = w1.shape[1]
    M = T * B

    # Pad the contraction dim up to a lane multiple and M up to the tile size
    # so every grid block is full (zero rows/cols contribute nothing).
    K = _round_up(C_in, 128)
    tm = min(tm, _round_up(M, 8))
    M_pad = _round_up(M, tm)

    x2d = x_tbc.reshape(M, C_in)
    x2d = jnp.pad(x2d, ((0, M_pad - M), (0, K - C_in))).astype(jnp.bfloat16)
    w1p = jnp.pad(w1, ((0, K - C_in), (0, 0))).astype(jnp.bfloat16)
    # Fold the first dropout's 1/(1-p) rescale into w2 (one host-side mul).
    w2s = w2 * (1.0 / (1.0 - p)) if (training and p > 0.0) else w2
    w2s = w2s.astype(jnp.bfloat16)
    b1_2d = b1.reshape(1, H).astype(jnp.float32)
    b2_2d = b2.reshape(1, H).astype(jnp.float32)
    seed_arr = jnp.asarray([seed], dtype=jnp.int32)

    kernel = functools.partial(prenet_kernel, p=float(p),
                               training=bool(training), tm=tm)
    out2d = pl.pallas_call(
        kernel,
        out_shape=jax.ShapeDtypeStruct((M_pad, H), jnp.float32),
        grid_spec=pltpu.PrefetchScalarGridSpec(
            num_scalar_prefetch=1,
            grid=(M_pad // tm,),
            in_specs=[
                pl.BlockSpec((tm, K), lambda i, seed: (i, 0)),   # x tile
                pl.BlockSpec((K, H), lambda i, seed: (0, 0)),    # w1 (resident)
                pl.BlockSpec((1, H), lambda i, seed: (0, 0)),    # b1
                pl.BlockSpec((H, H), lambda i, seed: (0, 0)),    # w2 (resident)
                pl.BlockSpec((1, H), lambda i, seed: (0, 0)),    # b2
            ],
            out_specs=pl.BlockSpec((tm, H), lambda i, seed: (i, 0)),
        ),
        compiler_params=pltpu.CompilerParams(
            dimension_semantics=("parallel",)),
    )(seed_arr, x2d, w1p, b1_2d, w2s, b2_2d)

    # TODO(synk): emit bf16 output directly if the downstream consumer
    # (attention RNN) accepts it — halves HBM writeback bytes.
    return out2d[:M].reshape(T, B, H)


if __name__ == "__main__":
    # PreNet-consistent small shapes: T=8 frames, B=2, 80 mel dims -> 256.
    T, B, C_IN, C_OUT = 8, 2, 80, 256

    key = jax.random.PRNGKey(0)
    kx, kw1, kb1, kw2, kb2 = jax.random.split(key, 5)

    x = jax.random.normal(kx, (T, B, C_IN), dtype=jnp.float32)

    # PyTorch Linear stores (out, in); we keep (in, out) so y = x @ W + b.
    lim1 = 1.0 / float(C_IN) ** 0.5
    w1 = jax.random.uniform(kw1, (C_IN, C_OUT), jnp.float32, -lim1, lim1)
    b1 = jax.random.uniform(kb1, (C_OUT,), jnp.float32, -lim1, lim1)
    lim2 = 1.0 / float(C_OUT) ** 0.5
    w2 = jax.random.uniform(kw2, (C_OUT, C_OUT), jnp.float32, -lim2, lim2)
    b2 = jax.random.uniform(kb2, (C_OUT,), jnp.float32, -lim2, lim2)

    # Training path (dropout on).
    out_train = jax.block_until_ready(
        prenet_forward(x, w1, b1, w2, b2, seed=1234, p=0.5, training=True))
    assert out_train.shape == (T, B, C_OUT), out_train.shape
    assert bool(jnp.all(jnp.isfinite(out_train)))

    # Eval path (dropout off) vs pure-JAX reference.  Mirror the kernel's
    # bf16 MXU inputs (bf16 products are exact in f32; only accumulation
    # order differs).
    out_eval = jax.block_until_ready(
        prenet_forward(x, w1, b1, w2, b2, seed=0, p=0.5, training=False))
    xb = x.reshape(T * B, C_IN).astype(jnp.bfloat16).astype(jnp.float32)
    w1b = w1.astype(jnp.bfloat16).astype(jnp.float32)
    w2b = w2.astype(jnp.bfloat16).astype(jnp.float32)
    h_ref = jnp.maximum(xb @ w1b + b1, 0.0)
    h_ref = h_ref.astype(jnp.bfloat16).astype(jnp.float32)
    ref = jnp.maximum(h_ref @ w2b + b2, 0.0).reshape(T, B, C_OUT)
    assert jnp.allclose(out_eval, ref, atol=5e-3, rtol=5e-3), \
        float(jnp.max(jnp.abs(out_eval - ref)))

    # Dropout sanity: training output should have clearly more exact zeros
    # than the ReLU-only eval output.
    frac_eval = float(jnp.mean(out_eval == 0.0))
    frac_train = float(jnp.mean(out_train == 0.0))
    assert frac_train > frac_eval + 0.05, (frac_eval, frac_train)

    print("KERNEL_OK")
</pallas_src>

<mosaic_0001>
module attributes {stable_mosaic.version = 11 : i64} {
  func.func @prenet_kernel(%arg0: i32, %arg1: memref<1xi32, #tpu.memory_space<smem>>, %arg2: memref<16x128xbf16, #tpu.memory_space<vmem>>, %arg3: memref<128x256xbf16, #tpu.memory_space<vmem>>, %arg4: memref<1x256xf32, #tpu.memory_space<vmem>>, %arg5: memref<256x256xbf16, #tpu.memory_space<vmem>>, %arg6: memref<1x256xf32, #tpu.memory_space<vmem>>, %arg7: memref<16x256xf32, #tpu.memory_space<vmem>>) attributes {dimension_semantics = [#tpu.dimension_semantics<parallel>], iteration_bounds = array<i64: 1>, scalar_prefetch = 1 : i64, scratch_operands = 0 : i64, tpu.core_type = #tpu.core_type<tc>, window_params = [{transform_indices = @transform_0, window_bounds = array<i64: 16, 128>}, {pipeline_mode = #tpu.pipeline_mode<synchronous>, transform_indices = @transform_1, window_bounds = array<i64: 128, 256>}, {pipeline_mode = #tpu.pipeline_mode<synchronous>, transform_indices = @transform_2, window_bounds = array<i64: 1, 256>}, {pipeline_mode = #tpu.pipeline_mode<synchronous>, transform_indices = @transform_3, window_bounds = array<i64: 256, 256>}, {pipeline_mode = #tpu.pipeline_mode<synchronous>, transform_indices = @transform_4, window_bounds = array<i64: 1, 256>}, {transform_indices = @transform_5, window_bounds = array<i64: 16, 256>}]} {
    %c0 = arith.constant 0 : index
    %0 = memref.load %arg1[%c0] : memref<1xi32, #tpu.memory_space<smem>>
    %c16_i32 = arith.constant 16 : i32
    %1 = arith.muli %arg0, %c16_i32 : i32
    %c0_0 = arith.constant 0 : index
    %c0_1 = arith.constant 0 : index
    %2 = vector.load %arg2[%c0_0, %c0_1] : memref<16x128xbf16, #tpu.memory_space<vmem>>, vector<16x128xbf16>
    %c0_2 = arith.constant 0 : index
    %c0_3 = arith.constant 0 : index
    %3 = vector.load %arg3[%c0_2, %c0_3] : memref<128x256xbf16, #tpu.memory_space<vmem>>, vector<128x256xbf16>
    %cst = arith.constant dense<0.000000e+00> : vector<16x256xf32>
    %4 = tpu.matmul %2, %3, %cst {dimension_numbers = #tpu.dot_dimension_numbers<[1], [0], [0], [1], [0, 0, 1, 1], [], []>} : vector<16x128xbf16>, vector<128x256xbf16>, vector<16x256xf32> -> vector<16x256xf32>
    %c0_4 = arith.constant 0 : index
    %c0_5 = arith.constant 0 : index
    %5 = vector.load %arg4[%c0_4, %c0_5] : memref<1x256xf32, #tpu.memory_space<vmem>>, vector<1x256xf32>
    %6 = vector.broadcast %5 : vector<1x256xf32> to vector<16x256xf32>
    %7 = arith.addf %4, %6 : vector<16x256xf32>
    %cst_6 = arith.constant 0.000000e+00 : f32
    %8 = vector.broadcast %cst_6 : f32 to vector<16x256xf32>
    %9 = arith.maximumf %7, %8 : vector<16x256xf32>
    %10 = tpu.iota {dimensions = array<i32: 0>} : vector<16x256xi32>
    %11 = vector.broadcast %1 : i32 to vector<16x256xi32>
    %12 = arith.addi %10, %11 : vector<16x256xi32>
    %13 = tpu.iota {dimensions = array<i32: 1>} : vector<16x256xi32>
    %c-1640531535_i32 = arith.constant -1640531535 : i32
    %14 = vector.broadcast %c-1640531535_i32 : i32 to vector<16x256xi32>
    %15 = arith.muli %12, %14 : vector<16x256xi32>
    %c-2048144777_i32 = arith.constant -2048144777 : i32
    %16 = vector.broadcast %c-2048144777_i32 : i32 to vector<16x256xi32>
    %17 = arith.muli %13, %16 : vector<16x256xi32>
    %18 = arith.xori %15, %17 : vector<16x256xi32>
    %c1_i32 = arith.constant 1 : i32
    %19 = arith.addi %0, %c1_i32 : i32
    %c-1028477379_i32 = arith.constant -1028477379 : i32
    %20 = arith.muli %19, %c-1028477379_i32 : i32
    %21 = vector.broadcast %20 : i32 to vector<16x256xi32>
    %22 = arith.addi %18, %21 : vector<16x256xi32>
    %c16_i32_7 = arith.constant 16 : i32
    %23 = vector.broadcast %c16_i32_7 : i32 to vector<16x256xi32>
    %24 = arith.shrui %22, %23 : vector<16x256xi32>
    %25 = arith.xori %22, %24 : vector<16x256xi32>
    %c-2048144789_i32 = arith.constant -2048144789 : i32
    %26 = vector.broadcast %c-2048144789_i32 : i32 to vector<16x256xi32>
    %27 = arith.muli %25, %26 : vector<16x256xi32>
    %c13_i32 = arith.constant 13 : i32
    %28 = vector.broadcast %c13_i32 : i32 to vector<16x256xi32>
    %29 = arith.shrui %27, %28 : vector<16x256xi32>
    %30 = arith.xori %27, %29 : vector<16x256xi32>
    %c-1028477387_i32 = arith.constant -1028477387 : i32
    %31 = vector.broadcast %c-1028477387_i32 : i32 to vector<16x256xi32>
    %32 = arith.muli %30, %31 : vector<16x256xi32>
    %c16_i32_8 = arith.constant 16 : i32
    %33 = vector.broadcast %c16_i32_8 : i32 to vector<16x256xi32>
    %34 = arith.shrui %32, %33 : vector<16x256xi32>
    %35 = arith.xori %32, %34 : vector<16x256xi32>
    %c-2147483648_i32 = arith.constant -2147483648 : i32
    %36 = vector.broadcast %c-2147483648_i32 : i32 to vector<16x256xi32>
    %37 = arith.cmpi uge, %35, %36 : vector<16x256xi32>
    %cst_9 = arith.constant 0.000000e+00 : f32
    %38 = vector.broadcast %cst_9 : f32 to vector<16x256xf32>
    %39 = arith.select %37, %9, %38 : vector<16x256xi1>, vector<16x256xf32>
    %40 = arith.truncf %39 : vector<16x256xf32> to vector<16x256xbf16>
    %c0_10 = arith.constant 0 : index
    %c0_11 = arith.constant 0 : index
    %41 = vector.load %arg5[%c0_10, %c0_11] : memref<256x256xbf16, #tpu.memory_space<vmem>>, vector<256x256xbf16>
    %cst_12 = arith.constant dense<0.000000e+00> : vector<16x256xf32>
    %42 = tpu.matmul %40, %41, %cst_12 {dimension_numbers = #tpu.dot_dimension_numbers<[1], [0], [0], [1], [0, 0, 1, 1], [], []>} : vector<16x256xbf16>, vector<256x256xbf16>, vector<16x256xf32> -> vector<16x256xf32>
    %c0_13 = arith.constant 0 : index
    %c0_14 = arith.constant 0 : index
    %43 = vector.load %arg6[%c0_13, %c0_14] : memref<1x256xf32, #tpu.memory_space<vmem>>, vector<1x256xf32>
    %44 = vector.broadcast %43 : vector<1x256xf32> to vector<16x256xf32>
    %45 = arith.addf %42, %44 : vector<16x256xf32>
    %cst_15 = arith.constant 0.000000e+00 : f32
    %46 = vector.broadcast %cst_15 : f32 to vector<16x256xf32>
    %47 = arith.maximumf %45, %46 : vector<16x256xf32>
    %48 = tpu.iota {dimensions = array<i32: 0>} : vector<16x256xi32>
    %49 = vector.broadcast %1 : i32 to vector<16x256xi32>
    %50 = arith.addi %48, %49 : vector<16x256xi32>
    %51 = tpu.iota {dimensions = array<i32: 1>} : vector<16x256xi32>
    %c-1640531535_i32_16 = arith.constant -1640531535 : i32
    %52 = vector.broadcast %c-1640531535_i32_16 : i32 to vector<16x256xi32>
    %53 = arith.muli %50, %52 : vector<16x256xi32>
    %c-2048144777_i32_17 = arith.constant -2048144777 : i32
    %54 = vector.broadcast %c-2048144777_i32_17 : i32 to vector<16x256xi32>
    %55 = arith.muli %51, %54 : vector<16x256xi32>
    %56 = arith.xori %53, %55 : vector<16x256xi32>
    %c2_i32 = arith.constant 2 : i32
    %57 = arith.addi %0, %c2_i32 : i32
    %c-1028477379_i32_18 = arith.constant -1028477379 : i32
    %58 = arith.muli %57, %c-1028477379_i32_18 : i32
    %59 = vector.broadcast %58 : i32 to vector<16x256xi32>
    %60 = arith.addi %56, %59 : vector<16x256xi32>
    %c16_i32_19 = arith.constant 16 : i32
    %61 = vector.broadcast %c16_i32_19 : i32 to vector<16x256xi32>
    %62 = arith.shrui %60, %61 : vector<16x256xi32>
    %63 = arith.xori %60, %62 : vector<16x256xi32>
    %c-2048144789_i32_20 = arith.constant -2048144789 : i32
    %64 = vector.broadcast %c-2048144789_i32_20 : i32 to vector<16x256xi32>
    %65 = arith.muli %63, %64 : vector<16x256xi32>
    %c13_i32_21 = arith.constant 13 : i32
    %66 = vector.broadcast %c13_i32_21 : i32 to vector<16x256xi32>
    %67 = arith.shrui %65, %66 : vector<16x256xi32>
    %68 = arith.xori %65, %67 : vector<16x256xi32>
    %c-1028477387_i32_22 = arith.constant -1028477387 : i32
    %69 = vector.broadcast %c-1028477387_i32_22 : i32 to vector<16x256xi32>
    %70 = arith.muli %68, %69 : vector<16x256xi32>
    %c16_i32_23 = arith.constant 16 : i32
    %71 = vector.broadcast %c16_i32_23 : i32 to vector<16x256xi32>
    %72 = arith.shrui %70, %71 : vector<16x256xi32>
    %73 = arith.xori %70, %72 : vector<16x256xi32>
    %c-2147483648_i32_24 = arith.constant -2147483648 : i32
    %74 = vector.broadcast %c-2147483648_i32_24 : i32 to vector<16x256xi32>
    %75 = arith.cmpi uge, %73, %74 : vector<16x256xi32>
    %cst_25 = arith.constant 2.000000e+00 : f32
    %cst_26 = arith.constant 0.000000e+00 : f32
    %76 = vector.broadcast %cst_25 : f32 to vector<16x256xf32>
    %77 = vector.broadcast %cst_26 : f32 to vector<16x256xf32>
    %78 = arith.select %75, %76, %77 : vector<16x256xi1>, vector<16x256xf32>
    %79 = arith.mulf %47, %78 : vector<16x256xf32>
    %c0_27 = arith.constant 0 : index
    %c0_28 = arith.constant 0 : index
    %80 = vector.load %arg7[%c0_27, %c0_28] : memref<16x256xf32, #tpu.memory_space<vmem>>, vector<16x256xf32>
    tpu.vector_store %arg7[%c0_27, %c0_28], %79 {strides = array<i32>} : memref<16x256xf32, #tpu.memory_space<vmem>>, vector<16x256xf32>,
    return
  }
  func.func @transform_0(%arg0: i32, %arg1: memref<1xi32, #tpu.memory_space<smem>>) -> (i32, i32) {
    %c0_i32 = arith.constant 0 : i32
    %c0_i32_0 = arith.constant 0 : i32
    return %arg0, %c0_i32 : i32, i32
  }
  func.func @transform_1(%arg0: i32, %arg1: memref<1xi32, #tpu.memory_space<smem>>) -> (i32, i32) {
    %c0_i32 = arith.constant 0 : i32
    %c0_i32_0 = arith.constant 0 : i32
    %c0_i32_1 = arith.constant 0 : i32
    return %c0_i32, %c0_i32_0 : i32, i32
  }
  func.func @transform_2(%arg0: i32, %arg1: memref<1xi32, #tpu.memory_space<smem>>) -> (i32, i32) {
    %c0_i32 = arith.constant 0 : i32
    %c0_i32_0 = arith.constant 0 : i32
    %c0_i32_1 = arith.constant 0 : i32
    return %c0_i32, %c0_i32_0 : i32, i32
  }
  func.func @transform_3(%arg0: i32, %arg1: memref<1xi32, #tpu.memory_space<smem>>) -> (i32, i32) {
    %c0_i32 = arith.constant 0 : i32
    %c0_i32_0 = arith.constant 0 : i32
    %c0_i32_1 = arith.constant 0 : i32
    return %c0_i32, %c0_i32_0 : i32, i32
  }
  func.func @transform_4(%arg0: i32, %arg1: memref<1xi32, #tpu.memory_space<smem>>) -> (i32, i32) {
    %c0_i32 = arith.constant 0 : i32
    %c0_i32_0 = arith.constant 0 : i32
    %c0_i32_1 = arith.constant 0 : i32
    return %c0_i32, %c0_i32_0 : i32, i32
  }
  func.func @transform_5(%arg0: i32, %arg1: memref<1xi32, #tpu.memory_space<smem>>) -> (i32, i32) {
    %c0_i32 = arith.constant 0 : i32
    %c0_i32_0 = arith.constant 0 : i32
    return %arg0, %c0_i32 : i32, i32
  }
}

</mosaic_0001>

<bundles_post_ra>
// kernel: tpu_custom_call.1
= control target key start
LH: loop header
LB: loop body
LE: loop exit
PB: predicated region body
PF: predicated region fallthrough
CT: control target
= control target key end

     0   :  { %12 = vsyncpa [#allocation5], 0  ;;  %s997_s0 = inlined_call_operand.<no memory space> [shape: s32[1], index: 0, kind: input, shape index: {}]   ;;  %s998_s1 = inlined_call_operand.hbm [shape: bf16[16,128], index: 1, kind: input, shape index: {}]   ;;  %s999_s2 = inlined_call_operand.hbm [shape: bf16[128,256], index: 2, kind: input, shape index: {}]   ;;  %s1000_s3 = inlined_call_operand.vmem [shape: f32[1,256], index: 3, kind: input, shape index: {}]   ;;  %s1001_s4 = inlined_call_operand.hbm [shape: bf16[256,256], index: 4, kind: input, shape index: {}]   ;;  %s1002_s5 = inlined_call_operand.vmem [shape: f32[1,256], index: 5, kind: input, shape index: {}]   ;;  %s1003_s6 = inlined_call_operand.hbm [shape: f32[16,256], index: 6, kind: output, shape index: {}]  }
   0x1   :  { %13 = vsyncpa [#allocation8], 0 }
   0x2   :  { %14 = vsyncpa [#allocation6], 0  ;;  %s854_s21 = smov [#allocation7]   ;;  %s760_s25 = scalar_lea.hbm %s999_s2, 2048 }
   0x3   :  { %s32_s22 = sshll.u32 %s854_s21, 4  ;;  %p761_p0 = scmp.ne.s32.totalorder %s999_s2, %s760_s25  ;;  %s33_s22 = int_to_ptr.vmem [resolvable:$true] %s32_s22 }
   0x4   :  { %p764_p1 = scmp.lt.u32.totalorder %s760_s25, %s999_s2 }
   0x6   :  { %p766_p2 = pnand %p764_p1, %p761_p0 }
   0x8   :  { %769 = shalt.err (!%p766_p2)
}
   0x9   :  { %s770_s30 = scalar_lea.vmem %s33_s22, 2048  ;;  %p775_p4 = scmp.lt.s32.totalorder %s33_s22, %s33_s22 }
   0xa   :  { %p771_p3 = scmp.ne.s32.totalorder %s33_s22, %s770_s30  ;;  %p776_p5 = scmp.lt.s32.totalorder %s770_s30, %s770_s30 }
   0xc   :  { %p777_p6 = por %p776_p5, %p775_p4 }
   0xe   :  { %p778_p7 = pnand %p777_p6, %p771_p3 }
  0x10   :  { %781 = shalt.err (!%p778_p7)
}
  0x11   :  { %s855_s7 = smov 128   ;;  %s856_s8 = smov 8  }
  0x12   :  { %38 = dma.hbm_to_vmem [thread:$0]  %s999_s2, 2048, %s33_s22, [#allocation8], %s855_s7, %s855_s7, %s856_s8  }
  0x13   :  { %s857_s11 = smov [#allocation4]   ;;  %s782_s15 = scalar_lea.hbm %s998_s1, 128 }
  0x14   :  { %s20_s12 = sshll.u32 %s857_s11, 4  ;;  %p783_p8 = scmp.ne.s32.totalorder %s998_s1, %s782_s15  ;;  %s21_s12 = int_to_ptr.vmem [resolvable:$true] %s20_s12 }
  0x15   :  { %p786_p9 = scmp.lt.u32.totalorder %s782_s15, %s998_s1 }
  0x17   :  { %p788_p10 = pnand %p786_p9, %p783_p8 }
  0x19   :  { %791 = shalt.err (!%p788_p10)
}
  0x1a   :  { %s792_s20 = scalar_lea.vmem %s21_s12, 128  ;;  %p797_p12 = scmp.lt.s32.totalorder %s21_s12, %s21_s12 }
  0x1b   :  { %p793_p11 = scmp.ne.s32.totalorder %s21_s12, %s792_s20  ;;  %p798_p13 = scmp.lt.s32.totalorder %s792_s20, %s792_s20 }
  0x1d   :  { %p799_p0 = por %p798_p13, %p797_p12 }
  0x1f   :  { %p800_p1 = pnand %p799_p0, %p793_p11 }
  0x21   :  { %803 = shalt.err (!%p800_p1)
}
  0x22   :  { %s858_s2 = smov 64   ;;  %s859_s21 = smov 4  }
  0x23   :  { %26 = dma.hbm_to_vmem [thread:$0]  %s998_s1, 128, %s21_s12, [#allocation5], %s858_s2, %s858_s2, %s859_s21  }
  0x24   :  { %s860_s24 = smov [#allocation9]   ;;  %s804_s28 = scalar_lea.hbm %s1001_s4, 4096 }
  0x25   :  { %s46_s25 = sshll.u32 %s860_s24, 4  ;;  %p805_p2 = scmp.ne.s32.totalorder %s1001_s4, %s804_s28  ;;  %s47_s25 = int_to_ptr.vmem [resolvable:$true] %s46_s25 }
  0x26   :  { %p808_p3 = scmp.lt.u32.totalorder %s804_s28, %s1001_s4 }
  0x28   :  { %p810_p4 = pnand %p808_p3, %p805_p2 }
  0x2a   :  { %813 = shalt.err (!%p810_p4)
}
  0x2b   :  { %s814_s11 = scalar_lea.vmem %s47_s25, 4096  ;;  %p819_p6 = scmp.lt.s32.totalorder %s47_s25, %s47_s25 }
  0x2c   :  { %p815_p5 = scmp.ne.s32.totalorder %s47_s25, %s814_s11  ;;  %p820_p7 = scmp.lt.s32.totalorder %s814_s11, %s814_s11 }
  0x2e   :  { %p821_p8 = por %p820_p7, %p819_p6 }
  0x30   :  { %p822_p9 = pnand %p821_p8, %p815_p5 }
  0x32   :  { %825 = shalt.err (!%p822_p9)
}
  0x33   :  { %52 = dma.hbm_to_vmem [thread:$0]  %s1001_s4, 4096, %s47_s25, [#allocation8], %s855_s7, %s855_s7, %s856_s8  }
  0x34   :  { %848 = dma.done.wait [#allocation5], 128  }
  0x35   :  { %849 = vsyncadd [#allocation5], 4294967168 }
  0x36   :  { %850 = dma.done.wait [#allocation8], 6144  }
  0x37   :  { %851 = vsyncadd [#allocation8], 4294961152  ;;  %v861_v0 = vmov 0   ;;  %v687_v1 = vld [vmem:[#allocation7 + $0x4] ss:$8 sps:$4 sm:$0xff]   ;;  %v711_v28 = vld [vmem:[#allocation4] sm:$0xff]   ;;  %v87_v50 = vlaneseq }
  0x38   :  { %215 = vmatprep.mubr.bf16.mxu0 %v861_v0  ;;  %v689_v2 = vld [vmem:[#allocation7] ss:$8 sps:$4 sm:$0xff]   ;;  %183 = vmatprep.subr.bf16.mxu0 %v687_v1  ;;  %v690_v3 = vld [vmem:[#allocation7 + $0x14] ss:$8 sps:$4 sm:$0xff]   ;;  %v692_v4 = vld [vmem:[#allocation7 + $0x10] ss:$8 sps:$4 sm:$0xff]  }
  0x39   :  { %184 = vmatpush1.bf16.msra.mxu0 %v689_v2  ;;  %v693_v5 = vld [vmem:[#allocation7 + $0x24] ss:$8 sps:$4 sm:$0xff]   ;;  %v695_v6 = vld [vmem:[#allocation7 + $0x20] ss:$8 sps:$4 sm:$0xff]   ;;  %v696_v7 = vld [vmem:[#allocation7 + $0x34] ss:$8 sps:$4 sm:$0xff]  }
  0x3a   :  { %185 = vmatprep.subr.bf16.mxu0 %v690_v3  ;;  %v698_v8 = vld [vmem:[#allocation7 + $0x30] ss:$8 sps:$4 sm:$0xff]   ;;  %v699_v9 = vld [vmem:[#allocation7 + $0x44] ss:$8 sps:$4 sm:$0xff]   ;;  %v714_v11 = vld [vmem:[#allocation9] ss:$8 sps:$4 sm:$0xff]  }
  0x3b   :  { %v712_v10 = vld [vmem:[#allocation9 + $0x4] ss:$8 sps:$4 sm:$0xff]   ;;  %v715_v12 = vld [vmem:[#allocation9 + $0x14] ss:$8 sps:$4 sm:$0xff]   ;;  %v701_v13 = vld [vmem:[#allocation7 + $0x40] ss:$8 sps:$4 sm:$0xff]  }
  0x3c   :  { %500 = vmatprep.subr.bf16.mxu1 %v712_v10  ;;  %v717_v14 = vld [vmem:[#allocation9 + $0x10] ss:$8 sps:$4 sm:$0xff]   ;;  %v702_v15 = vld [vmem:[#allocation7 + $0x54] ss:$8 sps:$4 sm:$0xff]   ;;  %v718_v16 = vld [vmem:[#allocation9 + $0x24] ss:$8 sps:$4 sm:$0xff]  }
  0x3d   :  { %186 = vmatpush1.bf16.msra.mxu0 %v692_v4  ;;  %501 = vmatpush1.bf16.msra.mxu1 %v714_v11  ;;  %v704_v17 = vld [vmem:[#allocation7 + $0x50] ss:$8 sps:$4 sm:$0xff]   ;;  %v720_v18 = vld [vmem:[#allocation9 + $0x20] ss:$8 sps:$4 sm:$0xff]   ;;  %v705_v19 = vld [vmem:[#allocation7 + $0x64] ss:$8 sps:$4 sm:$0xff]  }
  0x3e   :  { %187 = vmatprep.subr.bf16.mxu0 %v693_v5  ;;  %502 = vmatprep.subr.bf16.mxu1 %v715_v12  ;;  %v721_v20 = vld [vmem:[#allocation9 + $0x34] ss:$8 sps:$4 sm:$0xff]   ;;  %v707_v21 = vld [vmem:[#allocation7 + $0x60] ss:$8 sps:$4 sm:$0xff]   ;;  %v723_v22 = vld [vmem:[#allocation9 + $0x30] ss:$8 sps:$4 sm:$0xff]  }
  0x3f   :  { %v708_v23 = vld [vmem:[#allocation7 + $0x74] ss:$8 sps:$4 sm:$0xff]   ;;  %v724_v24 = vld [vmem:[#allocation9 + $0x44] ss:$8 sps:$4 sm:$0xff]   ;;  %v710_v25 = vld [vmem:[#allocation7 + $0x70] ss:$8 sps:$4 sm:$0xff]  }
  0x40   :  { %v726_v26 = vld [vmem:[#allocation9 + $0x40] ss:$8 sps:$4 sm:$0xff]   ;;  %v727_v27 = vld [vmem:[#allocation9 + $0x54] ss:$8 sps:$4 sm:$0xff]   ;;  %v729_v29 = vld [vmem:[#allocation9 + $0x50] ss:$8 sps:$4 sm:$0xff]  }
  0x41   :  { %188 = vmatpush1.bf16.msra.mxu0 %v695_v6  ;;  %503 = vmatpush1.bf16.msra.mxu1 %v717_v14  ;;  %v730_v30 = vld [vmem:[#allocation9 + $0x64] ss:$8 sps:$4 sm:$0xff]   ;;  %v732_v31 = vld [vmem:[#allocation9 + $0x60] ss:$8 sps:$4 sm:$0xff]   ;;  %v733_v32 = vld [vmem:[#allocation9 + $0x74] ss:$8 sps:$4 sm:$0xff]  }
  0x42   :  { %189 = vmatprep.subr.bf16.mxu0 %v696_v7  ;;  %504 = vmatprep.subr.bf16.mxu1 %v718_v16  ;;  %v735_v33 = vld [vmem:[#allocation9 + $0x70] ss:$8 sps:$4 sm:$0xff]   ;;  %v736_v34 = vld [vmem:[#allocation9 + $0x84] ss:$8 sps:$4 sm:$0xff]   ;;  %v738_v35 = vld [vmem:[#allocation9 + $0x80] ss:$8 sps:$4 sm:$0xff]  }
  0x43   :  { %v739_v36 = vld [vmem:[#allocation9 + $0x94] ss:$8 sps:$4 sm:$0xff]   ;;  %v741_v37 = vld [vmem:[#allocation9 + $0x90] ss:$8 sps:$4 sm:$0xff]   ;;  %v742_v38 = vld [vmem:[#allocation9 + $0xa4] ss:$8 sps:$4 sm:$0xff]  }
  0x44   :  { %v744_v39 = vld [vmem:[#allocation9 + $0xa0] ss:$8 sps:$4 sm:$0xff]   ;;  %v745_v40 = vld [vmem:[#allocation9 + $0xb4] ss:$8 sps:$4 sm:$0xff]   ;;  %v747_v41 = vld [vmem:[#allocation9 + $0xb0] ss:$8 sps:$4 sm:$0xff]  }
  0x45   :  { %190 = vmatpush1.bf16.msra.mxu0 %v698_v8  ;;  %505 = vmatpush1.bf16.msra.mxu1 %v720_v18  ;;  %v748_v42 = vld [vmem:[#allocation9 + $0xc4] ss:$8 sps:$4 sm:$0xff]   ;;  %v750_v43 = vld [vmem:[#allocation9 + $0xc0] ss:$8 sps:$4 sm:$0xff]   ;;  %v751_v44 = vld [vmem:[#allocation9 + $0xd4] ss:$8 sps:$4 sm:$0xff]  }
  0x46   :  { %191 = vmatprep.subr.bf16.mxu0 %v699_v9  ;;  %506 = vmatprep.subr.bf16.mxu1 %v721_v20  ;;  %v753_v45 = vld [vmem:[#allocation9 + $0xd0] ss:$8 sps:$4 sm:$0xff]   ;;  %v754_v46 = vld [vmem:[#allocation9 + $0xe4] ss:$8 sps:$4 sm:$0xff]   ;;  %v756_v47 = vld [vmem:[#allocation9 + $0xe0] ss:$8 sps:$4 sm:$0xff]  }
  0x47   :  { %v757_v48 = vld [vmem:[#allocation9 + $0xf4] ss:$8 sps:$4 sm:$0xff]   ;;  %v759_v49 = vld [vmem:[#allocation9 + $0xf0] ss:$8 sps:$4 sm:$0xff]   ;;  %v943_v51 = vshrl.u32 %v87_v50, 7  ;;  %v237_v52 = vand.u32 127, %v87_v50 }
  0x48   :  { %s247_s8 = sadd.s32 1, %s997_s0  ;;  %s547_s17 = sadd.s32 2, %s997_s0 }
  0x49   :  { %192 = vmatpush1.bf16.msra.mxu0 %v701_v13  ;;  %507 = vmatpush1.bf16.msra.mxu1 %v723_v22  ;;  %v232_v53 = vadd.s32 8, %v943_v51  ;;  %v238_v54 = vadd.s32 128, %v237_v52  ;;  %v239_v55 = vmul.u32 2654435761, %v943_v51  ;;  %s248_s13 = smul.u32 3266489917, %s247_s8 }
  0x4a   :  { %193 = vmatprep.subr.bf16.mxu0 %v702_v15  ;;  %508 = vmatprep.subr.bf16.mxu1 %v724_v24  ;;  %v241_v58 = vmul.u32 2246822519, %v237_v52  ;;  %s548_s18 = smul.u32 3266489917, %s547_s17 }
  0x4b   :  { %v240_v56 = vmul.u32 2654435761, %v232_v53  ;;  %v242_v57 = vmul.u32 2246822519, %v238_v54  ;;  %v249_v61 = vstv %s248_s13 }
  0x4c   :  { %v954_v62 = vxor.u32 %v241_v58, %v239_v55 }
  0x4d   :  { %194 = vmatpush1.bf16.msra.mxu0 %v704_v17  ;;  %509 = vmatpush1.bf16.msra.mxu1 %v726_v26  ;;  %v950_v59 = vxor.u32 %v242_v57, %v239_v55  ;;  %v952_v60 = vxor.u32 %v242_v57, %v240_v56  ;;  %v956_v63 = vxor.u32 %v241_v58, %v240_v56  ;;  %v89_v26 = vsub.s32 0, %v943_v51 }
  0x4e   :  { %195 = vmatprep.subr.bf16.mxu0 %v705_v19  ;;  %510 = vmatprep.subr.bf16.mxu1 %v727_v27  ;;  %v250_v2 = vadd.s32 %v249_v61, %v954_v62  ;;  %v549_v56 = vstv %s548_s18 }
  0x4f   :  { %v251_v0 = vadd.s32 %v249_v61, %v950_v59  ;;  %v253_v1 = vadd.s32 %v249_v61, %v952_v60  ;;  %v252_v3 = vadd.s32 %v249_v61, %v956_v63  ;;  %v550_v57 = vadd.s32 %v549_v56, %v954_v62 }
  0x50   :  { %v254_v6 = vshrl.u32 %v250_v2, 16  ;;  %v551_v58 = vadd.s32 %v549_v56, %v950_v59  ;;  %v552_v61 = vadd.s32 %v549_v56, %v956_v63 }
  0x51   :  { %196 = vmatpush1.bf16.msra.mxu0 %v707_v21  ;;  %511 = vmatpush1.bf16.msra.mxu1 %v729_v29  ;;  %v255_v4 = vshrl.u32 %v251_v0, 16  ;;  %v257_v5 = vshrl.u32 %v253_v1, 16  ;;  %v256_v7 = vshrl.u32 %v252_v3, 16  ;;  %v85_v29 = vld [vmem:[%s1000_s3] sm:$0x3] }
  0x52   :  { %197 = vmatprep.subr.bf16.mxu0 %v708_v23  ;;  %512 = vmatprep.subr.bf16.mxu1 %v730_v30  ;;  %v258_v10 = vxor.u32 %v254_v6, %v250_v2  ;;  %v93_v30 = vsub.s32 1, %v943_v51  ;;  %v555_v2 = vshrl.u32 %v551_v58, 16 }
  0x53   :  { %v259_v8 = vxor.u32 %v255_v4, %v251_v0  ;;  %v261_v9 = vxor.u32 %v257_v5, %v253_v1  ;;  %v260_v11 = vxor.u32 %v256_v7, %v252_v3  ;;  %v553_v0 = vadd.s32 %v549_v56, %v952_v60 }
  0x54   :  { %v262_v14 = vmul.u32 2246822507, %v258_v10  ;;  %v554_v1 = vshrl.u32 %v550_v57, 16  ;;  %v556_v3 = vshrl.u32 %v552_v61, 16  ;;  %v559_v6 = vxor.u32 %v555_v2, %v551_v58 }
  0x55   :  { %198 = vmatpush1.bf16.msra.mxu0 %v710_v25  ;;  %513 = vmatpush1.bf16.msra.mxu1 %v732_v31  ;;  %v263_v12 = vmul.u32 2246822507, %v259_v8  ;;  %v265_v13 = vmul.u32 2246822507, %v261_v9  ;;  %v557_v4 = vshrl.u32 %v553_v0, 16 }
  0x56   :  { %514 = vmatprep.subr.bf16.mxu1 %v733_v32  ;;  %v264_v15 = vmul.u32 2246822507, %v260_v11  ;;  %v266_v18 = vshrl.u32 %v262_v14, 13  ;;  %v558_v5 = vxor.u32 %v554_v1, %v550_v57  ;;  %v560_v7 = vxor.u32 %v556_v3, %v552_v61 }
  0x57   :  { %v267_v16 = vshrl.u32 %v263_v12, 13  ;;  %v269_v17 = vshrl.u32 %v265_v13, 13  ;;  %v561_v8 = vxor.u32 %v557_v4, %v553_v0  ;;  %v563_v10 = vmul.u32 2246822507, %v559_v6 }
  0x58   :  { %216 = vmatmul.mubr.bf16.vlgmr.msra.gmra.mrb[0].mxu0 %v711_v28  ;;  %v268_v19 = vshrl.u32 %v264_v15, 13  ;;  %v270_v22 = vxor.u32 %v266_v18, %v262_v14  ;;  %v562_v9 = vmul.u32 2246822507, %v558_v5  ;;  %v564_v11 = vmul.u32 2246822507, %v560_v7 }
  0x59   :  { %515 = vmatpush1.bf16.msra.mxu1 %v735_v33  ;;  %v271_v20 = vxor.u32 %v267_v16, %v263_v12  ;;  %v273_v21 = vxor.u32 %v269_v17, %v265_v13  ;;  %v90_v33 = vrot.slane %v85_v29, %v89_v26  ;;  %v565_v12 = vmul.u32 2246822507, %v561_v8 }
  0x5a   :  { %516 = vmatprep.subr.bf16.mxu1 %v736_v34  ;;  %v272_v23 = vxor.u32 %v268_v19, %v264_v15  ;;  %v274_v27 = vmul.u32 3266489909, %v270_v22  ;;  %v566_v13 = vshrl.u32 %v562_v9, 13  ;;  %v567_v62 = vshrl.u32 %v563_v10, 13 }
  0x5b   :  { %v275_v24 = vmul.u32 3266489909, %v271_v20  ;;  %v277_v25 = vmul.u32 3266489909, %v273_v21  ;;  %v568_v14 = vshrl.u32 %v564_v11, 13  ;;  %v569_v59 = vshrl.u32 %v565_v12, 13 }
  0x5c   :  { %v276_v28 = vmul.u32 3266489909, %v272_v23  ;;  %v278_v34 = vshrl.u32 %v274_v27, 16  ;;  %v570_v15 = vxor.u32 %v566_v13, %v562_v9  ;;  %v571_v63 = vxor.u32 %v567_v62, %v563_v10 }
  0x5d   :  { %517 = vmatpush1.bf16.msra.mxu1 %v738_v35  ;;  %v279_v31 = vshrl.u32 %v275_v24, 16  ;;  %v281_v32 = vshrl.u32 %v277_v25, 16  ;;  %v572_v16 = vxor.u32 %v568_v14, %v564_v11  ;;  %v573_v60 = vxor.u32 %v569_v59, %v565_v12 }
  0x5e   :  { %518 = vmatprep.subr.bf16.mxu1 %v739_v36  ;;  %v280_v35 = vshrl.u32 %v276_v28, 16  ;;  %v94_v36 = vrot.slane %v85_v29, %v93_v30  ;;  %v574_v17 = vmul.u32 3266489909, %v570_v15  ;;  %v575_v18 = vmul.u32 3266489909, %v571_v63 }
  0x5f   :  { %v576_v19 = vmul.u32 3266489909, %v572_v16  ;;  %v577_v20 = vmul.u32 3266489909, %v573_v60 }
  0x60   :  { %v578_v21 = vshrl.u32 %v574_v17, 16  ;;  %v579_v22 = vshrl.u32 %v575_v18, 16 }
  0x61   :  { %519 = vmatpush1.bf16.msra.mxu1 %v741_v37  ;;  %v580_v23 = vshrl.u32 %v576_v19, 16 }
  0x62   :  { %520 = vmatprep.subr.bf16.mxu1 %v742_v38  ;;  %v283_v38 = vxor.u32 %v279_v31, %v275_v24  ;;  %v328_v24 = vld [vmem:[%s1002_s5] sm:$0x3]  ;;  %s863_s5 = smov [#allocation10]  }
  0x63   :  { %v333_v29 = vrot.slane %v328_v24, %v89_v26  ;;  %v584_v31 = vxor.u32 %v580_v23, %v576_v19  ;;  %s607_s20 = sshll.u32 %s863_s5, 4  ;;  %s608_s20 = int_to_ptr.vmem [resolvable:$true] %s607_s20 }
  0x64   :  { %vm287_vm0 = vcmp.ge.u32.totalorder %v283_v38, 2147483648  ;;  %s826_s2 = scalar_lea.vmem %s608_s20, 512  ;;  %p831_p11 = scmp.lt.s32.totalorder %s608_s20, %s608_s20 }
  0x65   :  { %521 = vmatpush1.bf16.msra.mxu1 %v744_v39  ;;  %v285_v39 = vxor.u32 %v281_v32, %v277_v25  ;;  %v581_v25 = vshrl.u32 %v577_v20, 16  ;;  %v337_v32 = vrot.slane %v328_v24, %v93_v30  ;;  %vm588_vm8 = vcmp.ge.u32.totalorder %v584_v31, 2147483648  ;;  %p827_p10 = scmp.ne.s32.totalorder %s608_s20, %s826_s2  ;;  %p832_p12 = scmp.lt.s32.totalorder %s826_s2, %s826_s2 }
  0x66   :  { %522 = vmatprep.subr.bf16.mxu1 %v745_v40 }
  0x67   :  { %vm289_vm1 = vcmp.ge.u32.totalorder %v285_v39, 2147483648  ;;  %p833_p13 = por %p832_p12, %p831_p11 }
  0x68   :  { %vm669_vm4 = vmpackc.low %vm289_vm1, %vm287_vm0 }
  0x69   :  { %523 = vmatpush1.bf16.msra.mxu1 %v747_v41  ;;  %p834_p0 = pnand %p833_p13, %p827_p10 }
  0x6a   :  { %524 = vmatprep.subr.bf16.mxu1 %v748_v42  ;;  %v282_v42 = vxor.u32 %v278_v34, %v274_v27  ;;  %v582_v27 = vxor.u32 %v578_v21, %v574_v17 }
  0x6c   :  { %vm286_vm2 = vcmp.ge.u32.totalorder %v282_v42, 2147483648  ;;  %vm586_vm6 = vcmp.ge.u32.totalorder %v582_v27, 2147483648 }
  0x6d   :  { %525 = vmatpush1.bf16.msra.mxu1 %v750_v43  ;;  %v284_v43 = vxor.u32 %v280_v35, %v276_v28  ;;  %v583_v28 = vxor.u32 %v579_v22, %v575_v18 }
  0x6e   :  { %526 = vmatprep.subr.bf16.mxu1 %v751_v44 }
  0x6f   :  { %vm288_vm3 = vcmp.ge.u32.totalorder %v284_v43, 2147483648  ;;  %vm587_vm7 = vcmp.ge.u32.totalorder %v583_v28, 2147483648 }
  0x70   :  { %vm672_vm5 = vmpackc.low %vm288_vm3, %vm286_vm2 }
  0x71   :  { %527 = vmatpush1.bf16.msra.mxu1 %v753_v45 }
  0x72   :  { %528 = vmatprep.subr.bf16.mxu1 %v754_v46 }
  0x75   :  { %529 = vmatpush1.bf16.msra.mxu1 %v756_v47 }
  0x76   :  { %530 = vmatprep.subr.bf16.mxu1 %v757_v48 }
  0x79   :  { %531 = vmatpush1.bf16.msra.mxu1 %v759_v49 }
 0x12b   :  { %v217_v37 = vpop.f32.mrb[0].mxu0 }
 0x12c   :  { %v218_v40 = vadd.f32 %v217_v37, %v90_v33  ;;  %v219_v41 = vpop.f32.mrb[1].mxu0  ;;  %v862_v37 = vmov 0.0  }
 0x12d   :  { %v220_v44 = vadd.f32 %v219_v41, %v94_v36  ;;  %v221_v45 = vpop.f32.mrb[2].mxu0  ;;  %v590_v38 = vsel %vm586_vm6, 2.0, %v862_v37  ;;  %v591_v42 = vsel %vm587_vm7, 2.0, %v862_v37 }
 0x12e   :  { %v222_v46 = vadd.f32 %v221_v45, %v90_v33  ;;  %v223_v47 = vpop.f32.mrb[3].mxu0  ;;  %v226_v49 = vmax.f32 %v218_v40, 0.0  ;;  %v585_v33 = vxor.u32 %v581_v25, %v577_v20  ;;  %v592_v45 = vsel %vm588_vm8, 2.0, %v862_v37 }
 0x12f   :  { %v224_v48 = vadd.f32 %v223_v47, %v94_v36  ;;  %v227_v52 = vmax.f32 %v220_v44, 0.0 }
 0x130   :  { %v228_v50 = vmax.f32 %v222_v46, 0.0  ;;  %vm589_vm9 = vcmp.ge.u32.totalorder %v585_v33, 2147483648 }
 0x131   :  { %v229_v53 = vmax.f32 %v224_v48, 0.0  ;;  %v593_v47 = vsel %vm589_vm9, 2.0, %v862_v37 }
 0x132   :  { %v673_v54 = vpack.c.bf16 %v228_v50, %v226_v49 }
 0x133   :  { %v670_v55 = vpack.c.bf16 %v229_v53, %v227_v52 }
 0x135   :  { %671 = vmatprep.mubr.msk.bf16.mxu1 %vm669_vm4, %v670_v55 }
 0x136   :  { %674 = vmatmul.mubr.msk.bf16.vlgmr.msra.gmra.mrb[0].mxu1 %vm672_vm5, %v673_v54 }
 0x209   :  { %v534_v34 = vpop.f32.mrb[0].mxu1 }
 0x20a   :  { %v535_v35 = vadd.f32 %v534_v34, %v333_v29  ;;  %v536_v36 = vpop.f32.mrb[1].mxu1 }
 0x20b   :  { %v537_v39 = vadd.f32 %v536_v36, %v337_v32  ;;  %v538_v40 = vpop.f32.mrb[2].mxu1 }
 0x20c   :  { %v543_v41 = vmax.f32 %v535_v35, 0.0  ;;  %v539_v43 = vadd.f32 %v538_v40, %v333_v29  ;;  %v540_v26 = vpop.f32.mrb[3].mxu1 }
 0x20d   :  { %v544_v44 = vmax.f32 %v537_v39, 0.0  ;;  %v541_v51 = vadd.f32 %v540_v26, %v337_v32 }
 0x20e   :  { %v594_v30 = vmul.f32 %v590_v38, %v543_v41  ;;  %v545_v46 = vmax.f32 %v539_v43, 0.0 }
 0x20f   :  { %v595_v48 = vmul.f32 %v591_v42, %v544_v44  ;;  %v546_v49 = vmax.f32 %v541_v51, 0.0 }
 0x210   :  { %598 = vst [vmem:[#allocation10] sm:$0xff] %v594_v30  ;;  %v596_v50 = vmul.f32 %v592_v45, %v545_v46 }
 0x211   :  { %599 = vst [vmem:[#allocation10 + $0x8] sm:$0xff] %v595_v48  ;;  %v597_v52 = vmul.f32 %v593_v47, %v546_v49 }
 0x212   :  { %600 = vst [vmem:[#allocation10 + $0x10] sm:$0xff] %v596_v50 }
 0x213   :  { %601 = vst [vmem:[#allocation10 + $0x18] sm:$0xff] %v597_v52 }
 0x214   :  { %837 = shalt.err (!%p834_p0)
}
 0x215   :  { %s838_s23 = scalar_lea.hbm %s1003_s6, 512 }
 0x216   :  { %p839_p1 = scmp.ne.s32.totalorder %s1003_s6, %s838_s23  ;;  %p842_p2 = scmp.lt.u32.totalorder %s838_s23, %s1003_s6 }
 0x218   :  { %p844_p3 = pnand %p842_p2, %p839_p1 }
 0x21a   :  { %847 = shalt.err (!%p844_p3)
}
 0x21b   :  { %s864_s28 = smov 256   ;;  %s865_s29 = smov 16  }
 0x21c   :  { %613 = dma.vmem_to_hbm [thread:$0]  %s608_s20, 512, %s1003_s6, [#allocation6], %s864_s28, %s864_s28, %s865_s29  }
 0x21d   :  { %852 = dma.done.wait [#allocation6], 512  }
 0x21e   :  { %853 = vsyncadd [#allocation6], 4294966784 }
 0x21f   :  { %617 = vsyncpa [#allocation5], 1 }
 0x220   :  { %618 = vsyncpa [#allocation8], 1 }
 0x221   :  { %619 = vsyncpa [#allocation6], 1 }

</bundles_post_ra>
